<compile_context>
chip_gen: v5e
topology: v5e:2x2
jax: 0.10.0
libtpu: 0.0.40
codegen_flags: <defaults>
</compile_context>

<pallas_src>
import functools

import jax
import jax.numpy as jnp
from jax.experimental import pallas as pl
from jax.experimental.pallas import tpu as pltpu


def _w2v_kernel(xt_ref, xc_ref, wt_ref, ct_ref, o_ref):
    # xt_ref / xc_ref: VMEM (1, TB) int32 index tiles for this grid step.
    # wt_ref / ct_ref: VMEM (E, V) resident (transposed) embedding tables.
    # o_ref:           VMEM (1, TB) f32 sigmoid(dot) for this batch tile.
    table_dtype = wt_ref.dtype
    E, V = wt_ref.shape
    TB = xt_ref.shape[1]

    ids_t = xt_ref[...]                                      # (1, TB) int32
    ids_c = xc_ref[...]                                      # (1, TB) int32

    # One-hot gather on the MXU: onehot[v, b] = (ids[b] == v).
    iota_v = jax.lax.broadcasted_iota(jnp.int32, (V, TB), 0)  # (V, TB)
    oh_t = (iota_v == ids_t).astype(table_dtype)              # (V, TB)
    oh_c = (iota_v == ids_c).astype(table_dtype)              # (V, TB)

    # Gathered rows, batch dim on lanes: (E, V) @ (V, TB) -> (E, TB), f32 accum.
    w_rows = jnp.dot(wt_ref[...], oh_t, preferred_element_type=jnp.float32)
    c_rows = jnp.dot(ct_ref[...], oh_c, preferred_element_type=jnp.float32)

    # Row-wise dot product: reduce over the embedding (sublane) axis -> (1, TB).
    dot = jnp.sum(w_rows * c_rows, axis=0, keepdims=True)

    # sigmoid(dot) = 1 / (1 + exp(-dot)); exp and approximate reciprocal both run
    # on the EUP slot (idle here), keeping the divide off the VPU.
    denom = 1.0 + jnp.exp(-dot)
    o_ref[...] = pl.reciprocal(denom, approx=True)


def word2vec_forward(W, C, Xt, Xc, *, tile_b=256):
    """Pallas implementation of Word2Vec.forward(Xt, Xc) -> sigmoid(row-dot)."""
    V, E = W.shape
    B = Xt.shape[0]

    # Pad the embedding dim to a multiple of 128 (zero columns do not change the
    # dot products) so loads / the sublane reduction are unmasked along lanes.
    E_pad = ((E + 127) // 128) * 128
    if E_pad != E:
        W = jnp.pad(W, ((0, 0), (0, E_pad - E)))
        C = jnp.pad(C, ((0, 0), (0, E_pad - E)))

    # Small-vocab fast path: both tables (double-buffered) must comfortably fit
    # in scoped VMEM on every generation (v5e default 16 MiB scoped).
    table_vmem_bytes = 2 * 2 * V * E_pad * W.dtype.itemsize
    if table_vmem_bytes > 8 * 1024 * 1024:
        # TODO(synk): large-vocab path -- keep W/C in HBM (memory_space=pl.ANY)
        # and manually DMA-gather the TB rows of the next tile into a
        # double-buffered (2, TB, E) VMEM scratch with multiple copies in flight.
        raise NotImplementedError("embedding tables too large for VMEM-resident path")

    # Transpose tables so the gathered batch dimension lands on lanes.
    Wt = W.T  # (E_pad, V)
    Ct = C.T  # (E_pad, V)

    # Pad / reshape the index vectors into lane-dense (nt, TB) tiles.
    nt = pl.cdiv(B, tile_b)
    B_pad = nt * tile_b
    Xt_p = jnp.pad(Xt.astype(jnp.int32), (0, B_pad - B)).reshape(nt, tile_b)
    Xc_p = jnp.pad(Xc.astype(jnp.int32), (0, B_pad - B)).reshape(nt, tile_b)

    out = pl.pallas_call(
        _w2v_kernel,
        out_shape=jax.ShapeDtypeStruct((nt, tile_b), jnp.float32),
        grid=(nt,),
        in_specs=[
            pl.BlockSpec((1, tile_b), lambda i: (i, 0)),   # Xt tile
            pl.BlockSpec((1, tile_b), lambda i: (i, 0)),   # Xc tile
            pl.BlockSpec((E_pad, V), lambda i: (0, 0)),    # W^T, VMEM-resident
            pl.BlockSpec((E_pad, V), lambda i: (0, 0)),    # C^T, VMEM-resident
        ],
        out_specs=pl.BlockSpec((1, tile_b), lambda i: (i, 0)),
        compiler_params=pltpu.CompilerParams(
            dimension_semantics=("parallel",),   # batch tiles are independent
        ),
    )(Xt_p, Xc_p, Wt, Ct)

    return out.reshape(B_pad)[:B]


if __name__ == "__main__":
    # Small, deterministic synthetic setup (nn.Embedding default init is N(0, 1)).
    voc_size = 32
    embedding_size = 128
    batch = 8

    key = jax.random.PRNGKey(0)
    k_w, k_c, k_t, k_x = jax.random.split(key, 4)
    W = jax.random.normal(k_w, (voc_size, embedding_size), dtype=jnp.float32)
    C = jax.random.normal(k_c, (voc_size, embedding_size), dtype=jnp.float32)
    Xt = jax.random.randint(k_t, (batch,), 0, voc_size, dtype=jnp.int32)
    Xc = jax.random.randint(k_x, (batch,), 0, voc_size, dtype=jnp.int32)

    fwd = jax.jit(functools.partial(word2vec_forward, tile_b=256))
    out = fwd(W, C, Xt, Xc)
    out = jax.block_until_ready(out)

    # Pure-JAX reference for sanity checking.  Tolerance accounts for the
    # EUP approximate-reciprocal epilogue (~1e-4 relative error).
    ref = jax.nn.sigmoid(jnp.sum(W[Xt] * C[Xc], axis=-1))
    assert out.shape == (batch,)
    assert jnp.allclose(out, ref, atol=2e-3, rtol=2e-3), (out, ref)

    print("KERNEL_OK")
</pallas_src>

<mosaic_0001>
module attributes {stable_mosaic.version = 11 : i64} {
  func.func @_w2v_kernel(%arg0: i32, %arg1: memref<1x256xi32, #tpu.memory_space<vmem>>, %arg2: memref<1x256xi32, #tpu.memory_space<vmem>>, %arg3: memref<128x32xf32, #tpu.memory_space<vmem>>, %arg4: memref<128x32xf32, #tpu.memory_space<vmem>>, %arg5: memref<1x256xf32, #tpu.memory_space<vmem>>) attributes {dimension_semantics = [#tpu.dimension_semantics<parallel>], iteration_bounds = array<i64: 1>, scalar_prefetch = 0 : i64, scratch_operands = 0 : i64, tpu.core_type = #tpu.core_type<tc>, window_params = [{transform_indices = @transform_0, window_bounds = array<i64: 1, 256>}, {transform_indices = @transform_1, window_bounds = array<i64: 1, 256>}, {pipeline_mode = #tpu.pipeline_mode<synchronous>, transform_indices = @transform_2, window_bounds = array<i64: 128, 32>}, {pipeline_mode = #tpu.pipeline_mode<synchronous>, transform_indices = @transform_3, window_bounds = array<i64: 128, 32>}, {transform_indices = @transform_4, window_bounds = array<i64: 1, 256>}]} {
    %c0 = arith.constant 0 : index
    %c0_0 = arith.constant 0 : index
    %0 = vector.load %arg1[%c0, %c0_0] : memref<1x256xi32, #tpu.memory_space<vmem>>, vector<1x256xi32>
    %c0_1 = arith.constant 0 : index
    %c0_2 = arith.constant 0 : index
    %1 = vector.load %arg2[%c0_1, %c0_2] : memref<1x256xi32, #tpu.memory_space<vmem>>, vector<1x256xi32>
    %2 = tpu.iota {dimensions = array<i32: 0>} : vector<32x256xi32>
    %3 = vector.broadcast %0 : vector<1x256xi32> to vector<32x256xi32>
    %4 = arith.cmpi eq, %2, %3 : vector<32x256xi32>
    %5 = arith.extui %4 : vector<32x256xi1> to vector<32x256xi32>
    %6 = arith.sitofp %5 : vector<32x256xi32> to vector<32x256xf32>
    %7 = vector.broadcast %1 : vector<1x256xi32> to vector<32x256xi32>
    %8 = arith.cmpi eq, %2, %7 : vector<32x256xi32>
    %9 = arith.extui %8 : vector<32x256xi1> to vector<32x256xi32>
    %10 = arith.sitofp %9 : vector<32x256xi32> to vector<32x256xf32>
    %c0_3 = arith.constant 0 : index
    %c0_4 = arith.constant 0 : index
    %11 = vector.load %arg3[%c0_3, %c0_4] : memref<128x32xf32, #tpu.memory_space<vmem>>, vector<128x32xf32>
    %cst = arith.constant dense<0.000000e+00> : vector<128x256xf32>
    %12 = tpu.matmul %11, %6, %cst {dimension_numbers = #tpu.dot_dimension_numbers<[1], [0], [0], [1], [0, 0, 1, 1], [], []>} : vector<128x32xf32>, vector<32x256xf32>, vector<128x256xf32> -> vector<128x256xf32>
    %c0_5 = arith.constant 0 : index
    %c0_6 = arith.constant 0 : index
    %13 = vector.load %arg4[%c0_5, %c0_6] : memref<128x32xf32, #tpu.memory_space<vmem>>, vector<128x32xf32>
    %cst_7 = arith.constant dense<0.000000e+00> : vector<128x256xf32>
    %14 = tpu.matmul %13, %10, %cst_7 {dimension_numbers = #tpu.dot_dimension_numbers<[1], [0], [0], [1], [0, 0, 1, 1], [], []>} : vector<128x32xf32>, vector<32x256xf32>, vector<128x256xf32> -> vector<128x256xf32>
    %15 = arith.mulf %12, %14 : vector<128x256xf32>
    %cst_8 = arith.constant dense<0.000000e+00> : vector<256xf32>
    %16 = vector.multi_reduction <add>, %15, %cst_8 [0] : vector<128x256xf32> to vector<256xf32>
    %17 = vector.shape_cast %16 : vector<256xf32> to vector<1x256xf32>
    %cst_9 = arith.constant 0.000000e+00 : f32
    %18 = vector.broadcast %cst_9 : f32 to vector<1x256xf32>
    %19 = arith.subf %18, %17 : vector<1x256xf32>
    %20 = math.exp %19 : vector<1x256xf32>
    %cst_10 = arith.constant 1.000000e+00 : f32
    %21 = vector.broadcast %cst_10 : f32 to vector<1x256xf32>
    %22 = arith.addf %21, %20 : vector<1x256xf32>
    %23 = tpu.reciprocal %22 {approx = true} : vector<1x256xf32> -> vector<1x256xf32>
    %c0_11 = arith.constant 0 : index
    %c0_12 = arith.constant 0 : index
    %24 = vector.load %arg5[%c0_11, %c0_12] : memref<1x256xf32, #tpu.memory_space<vmem>>, vector<1x256xf32>
    tpu.vector_store %arg5[%c0_11, %c0_12], %23 {strides = array<i32>} : memref<1x256xf32, #tpu.memory_space<vmem>>, vector<1x256xf32>,
    return
  }
  func.func @transform_0(%arg0: i32) -> (i32, i32) {
    %c0_i32 = arith.constant 0 : i32
    %c0_i32_0 = arith.constant 0 : i32
    return %arg0, %c0_i32 : i32, i32
  }
  func.func @transform_1(%arg0: i32) -> (i32, i32) {
    %c0_i32 = arith.constant 0 : i32
    %c0_i32_0 = arith.constant 0 : i32
    return %arg0, %c0_i32 : i32, i32
  }
  func.func @transform_2(%arg0: i32) -> (i32, i32) {
    %c0_i32 = arith.constant 0 : i32
    %c0_i32_0 = arith.constant 0 : i32
    %c0_i32_1 = arith.constant 0 : i32
    return %c0_i32, %c0_i32_0 : i32, i32
  }
  func.func @transform_3(%arg0: i32) -> (i32, i32) {
    %c0_i32 = arith.constant 0 : i32
    %c0_i32_0 = arith.constant 0 : i32
    %c0_i32_1 = arith.constant 0 : i32
    return %c0_i32, %c0_i32_0 : i32, i32
  }
  func.func @transform_4(%arg0: i32) -> (i32, i32) {
    %c0_i32 = arith.constant 0 : i32
    %c0_i32_0 = arith.constant 0 : i32
    return %arg0, %c0_i32 : i32, i32
  }
}

</mosaic_0001>

<bundles_post_ra>
// kernel: word2vec_forward.1
= control target key start
LH: loop header
LB: loop body
LE: loop exit
PB: predicated region body
PF: predicated region fallthrough
CT: control target
= control target key end

     0   :  { %v19_v0 = vlaneseq  ;;  %v669_v11 = vmov 1.0   ;;  %vm92_vm13 = vcmask 261120   ;;  %s866_s1 = inlined_call_operand.vmem [shape: s32[1,256], index: 1, kind: input, shape index: {}]   ;;  %s867_s0 = inlined_call_operand.vmem [shape: s32[1,256], index: 0, kind: input, shape index: {}]   ;;  %s868_s3 = inlined_call_operand.vmem [shape: f32[128,32], index: 3, kind: input, shape index: {}]   ;;  %s869_s2 = inlined_call_operand.vmem [shape: f32[128,32], index: 2, kind: input, shape index: {}]   ;;  %s870_s4 = inlined_call_operand.vmem [shape: f32[1,256], index: 4, kind: output, shape index: {}]  }
   0x1   :  { %v18_v1 = vld [vmem:[%s866_s1] sm:$0x3]  ;;  %v272_v14 = vld [vmem:[%s868_s3 + $0x8] sm:$0xff]  ;;  %v273_v16 = vld [vmem:[%s868_s3 + $0x10] sm:$0xff] }
   0x2   :  { %v17_v2 = vld [vmem:[%s867_s0] sm:$0x3]  ;;  %v20_v3 = vshrl.u32 %v19_v0, 7  ;;  %v50_v4 = vperm.slane %v18_v1, 0  ;;  %v51_v5 = vperm.slane %v18_v1, 1  ;;  %v77_v15 = vld [vmem:[%s869_s2 + $0x8] sm:$0xff] }
   0x3   :  { %v24_v6 = vperm.slane %v17_v2, 0  ;;  %v25_v10 = vperm.slane %v17_v2, 1  ;;  %v271_v12 = vld [vmem:[%s868_s3] sm:$0xff]  ;;  %v78_v17 = vld [vmem:[%s869_s2 + $0x10] sm:$0xff]  ;;  %v274_v18 = vld [vmem:[%s868_s3 + $0x18] sm:$0xff] }
   0x4   :  { %v23_v7 = vadd.s32 24, %v20_v3  ;;  %v22_v8 = vadd.s32 16, %v20_v3  ;;  %v21_v9 = vadd.s32 8, %v20_v3  ;;  %vm52_vm11 = vcmp.eq.s32.totalorder %v20_v3, %v50_v4  ;;  %v76_v13 = vld [vmem:[%s869_s2] sm:$0xff]  ;;  %v79_v19 = vld [vmem:[%s869_s2 + $0x18] sm:$0xff]  ;;  %v276_v22 = vld [vmem:[%s868_s3 + $0x28] sm:$0xff] }
   0x5   :  { %vm53_vm12 = vcmp.eq.s32.totalorder %v20_v3, %v51_v5  ;;  %vm26_vm15 = vcmp.eq.s32.totalorder %v20_v3, %v24_v6  ;;  %v275_v20 = vld [vmem:[%s868_s3 + $0x20] sm:$0xff]  ;;  %v81_v23 = vld [vmem:[%s869_s2 + $0x28] sm:$0xff]  ;;  %v277_v24 = vld [vmem:[%s868_s3 + $0x30] sm:$0xff] }
   0x6   :  { %vm58_vm0 = vcmp.eq.s32.totalorder %v23_v7, %v50_v4  ;;  %vm59_vm1 = vcmp.eq.s32.totalorder %v23_v7, %v51_v5  ;;  %vm56_vm2 = vcmp.eq.s32.totalorder %v22_v8, %v50_v4  ;;  %vm57_vm3 = vcmp.eq.s32.totalorder %v22_v8, %v51_v5  ;;  %v80_v21 = vld [vmem:[%s869_s2 + $0x20] sm:$0xff]  ;;  %v82_v25 = vld [vmem:[%s869_s2 + $0x30] sm:$0xff]  ;;  %v278_v26 = vld [vmem:[%s868_s3 + $0x38] sm:$0xff] }
   0x7   :  { %620 = vmatpush.msk.msra.mxu2 %vm58_vm0, %v669_v11  ;;  %640 = vmatpush.msk.msra.mxu3 %vm59_vm1, %v669_v11  ;;  %vm32_vm4 = vcmp.eq.s32.totalorder %v23_v7, %v24_v6  ;;  %vm54_vm5 = vcmp.eq.s32.totalorder %v21_v9, %v50_v4  ;;  %vm55_vm6 = vcmp.eq.s32.totalorder %v21_v9, %v51_v5  ;;  %v83_v27 = vld [vmem:[%s869_s2 + $0x38] sm:$0xff]  ;;  %v279_v28 = vld [vmem:[%s868_s3 + $0x40] sm:$0xff]  ;;  %v280_v30 = vld [vmem:[%s868_s3 + $0x48] sm:$0xff]  ;;  %vm552_vm1 = vcmask 1040384  }
   0x8   :  { %580 = vmatpush.msk.msra.mxu0 %vm32_vm4, %v669_v11  ;;  %vm33_vm7 = vcmp.eq.s32.totalorder %v23_v7, %v25_v10  ;;  %vm30_vm8 = vcmp.eq.s32.totalorder %v22_v8, %v24_v6  ;;  %vm31_vm9 = vcmp.eq.s32.totalorder %v22_v8, %v25_v10  ;;  %vm28_vm10 = vcmp.eq.s32.totalorder %v21_v9, %v24_v6  ;;  %v84_v29 = vld [vmem:[%s869_s2 + $0x40] sm:$0xff]  ;;  %v85_v31 = vld [vmem:[%s869_s2 + $0x48] sm:$0xff]  ;;  %v281_v32 = vld [vmem:[%s868_s3 + $0x50] sm:$0xff] }
   0x9   :  { %621 = vmatpush.msk.msra.mxu2 %vm56_vm2, %v669_v11  ;;  %641 = vmatpush.msk.msra.mxu3 %vm57_vm3, %v669_v11  ;;  %vm29_vm14 = vcmp.eq.s32.totalorder %v21_v9, %v25_v10  ;;  %vm27_vm0 = vcmp.eq.s32.totalorder %v20_v3, %v25_v10  ;;  %v86_v33 = vld [vmem:[%s869_s2 + $0x50] sm:$0xff]  ;;  %v282_v34 = vld [vmem:[%s868_s3 + $0x58] sm:$0xff]  ;;  %v283_v36 = vld [vmem:[%s868_s3 + $0x60] sm:$0xff]  ;;  %vm557_vm2 = vcmp.lt.s32.totalorder %v19_v0, 256 }
   0xa   :  { %600 = vmatpush.msk.msra.mxu1 %vm33_vm7, %v669_v11  ;;  %581 = vmatpush.msk.msra.mxu0 %vm30_vm8, %v669_v11  ;;  %v87_v35 = vld [vmem:[%s869_s2 + $0x58] sm:$0xff]  ;;  %v88_v37 = vld [vmem:[%s869_s2 + $0x60] sm:$0xff]  ;;  %v284_v38 = vld [vmem:[%s868_s3 + $0x68] sm:$0xff] }
   0xb   :  { %622 = vmatpush.msk.msra.mxu2 %vm54_vm5, %v669_v11  ;;  %642 = vmatpush.msk.msra.mxu3 %vm55_vm6, %v669_v11  ;;  %v89_v39 = vld [vmem:[%s869_s2 + $0x68] sm:$0xff]  ;;  %v285_v40 = vld [vmem:[%s868_s3 + $0x70] sm:$0xff]  ;;  %v286_v42 = vld [vmem:[%s868_s3 + $0x78] sm:$0xff] }
   0xc   :  { %601 = vmatpush.msk.msra.mxu1 %vm31_vm9, %v669_v11  ;;  %582 = vmatpush.msk.msra.mxu0 %vm28_vm10, %v669_v11  ;;  %v90_v41 = vld [vmem:[%s869_s2 + $0x70] sm:$0xff]  ;;  %v91_v43 = vld [vmem:[%s869_s2 + $0x78] sm:$0xff] }
   0xd   :  { %623 = vmatpush.msk.msra.mxu2 %vm52_vm11, %v669_v11  ;;  %643 = vmatpush.msk.msra.mxu3 %vm53_vm12, %v669_v11 }
   0xe   :  { %624 = vmatmul.msk.f32.vlgmr.msra.gmra.mxu2 %vm92_vm13, %v271_v12  ;;  %644 = vmatmul.msk.f32.vlgmr.msra.gmra.mxu3 %vm92_vm13, %v271_v12 }
   0xf   :  { %602 = vmatpush.msk.msra.mxu1 %vm29_vm14, %v669_v11  ;;  %583 = vmatpush.msk.msra.mxu0 %vm26_vm15, %v669_v11 }
  0x10   :  { %584 = vmatmul.msk.f32.vlgmr.msra.gmra.mxu0 %vm92_vm13, %v76_v13 }
  0x11   :  { %603 = vmatpush.msk.msra.mxu1 %vm27_vm0, %v669_v11 }
  0x12   :  { %604 = vmatmul.msk.f32.vlgmr.msra.gmra.mxu1 %vm92_vm13, %v76_v13 }
  0x16   :  { %625 = vmatmul.msk.f32.gmra.mxu2 %vm92_vm13, %v272_v14  ;;  %645 = vmatmul.msk.f32.gmra.mxu3 %vm92_vm13, %v272_v14 }
  0x18   :  { %585 = vmatmul.msk.f32.gmra.mxu0 %vm92_vm13, %v77_v15 }
  0x1a   :  { %605 = vmatmul.msk.f32.gmra.mxu1 %vm92_vm13, %v77_v15 }
  0x1e   :  { %626 = vmatmul.msk.f32.gmra.mxu2 %vm92_vm13, %v273_v16  ;;  %646 = vmatmul.msk.f32.gmra.mxu3 %vm92_vm13, %v273_v16 }
  0x20   :  { %586 = vmatmul.msk.f32.gmra.mxu0 %vm92_vm13, %v78_v17 }
  0x22   :  { %606 = vmatmul.msk.f32.gmra.mxu1 %vm92_vm13, %v78_v17 }
  0x26   :  { %627 = vmatmul.msk.f32.gmra.mxu2 %vm92_vm13, %v274_v18  ;;  %647 = vmatmul.msk.f32.gmra.mxu3 %vm92_vm13, %v274_v18 }
  0x28   :  { %587 = vmatmul.msk.f32.gmra.mxu0 %vm92_vm13, %v79_v19 }
  0x2a   :  { %607 = vmatmul.msk.f32.gmra.mxu1 %vm92_vm13, %v79_v19 }
  0x2e   :  { %628 = vmatmul.msk.f32.gmra.mxu2 %vm92_vm13, %v275_v20  ;;  %648 = vmatmul.msk.f32.gmra.mxu3 %vm92_vm13, %v275_v20 }
  0x30   :  { %588 = vmatmul.msk.f32.gmra.mxu0 %vm92_vm13, %v80_v21 }
  0x32   :  { %608 = vmatmul.msk.f32.gmra.mxu1 %vm92_vm13, %v80_v21 }
  0x36   :  { %629 = vmatmul.msk.f32.gmra.mxu2 %vm92_vm13, %v276_v22  ;;  %649 = vmatmul.msk.f32.gmra.mxu3 %vm92_vm13, %v276_v22 }
  0x38   :  { %589 = vmatmul.msk.f32.gmra.mxu0 %vm92_vm13, %v81_v23 }
  0x3a   :  { %609 = vmatmul.msk.f32.gmra.mxu1 %vm92_vm13, %v81_v23 }
  0x3e   :  { %630 = vmatmul.msk.f32.gmra.mxu2 %vm92_vm13, %v277_v24  ;;  %650 = vmatmul.msk.f32.gmra.mxu3 %vm92_vm13, %v277_v24 }
  0x40   :  { %590 = vmatmul.msk.f32.gmra.mxu0 %vm92_vm13, %v82_v25 }
  0x42   :  { %610 = vmatmul.msk.f32.gmra.mxu1 %vm92_vm13, %v82_v25 }
  0x46   :  { %631 = vmatmul.msk.f32.gmra.mxu2 %vm92_vm13, %v278_v26  ;;  %651 = vmatmul.msk.f32.gmra.mxu3 %vm92_vm13, %v278_v26 }
  0x48   :  { %591 = vmatmul.msk.f32.gmra.mxu0 %vm92_vm13, %v83_v27 }
  0x4a   :  { %611 = vmatmul.msk.f32.gmra.mxu1 %vm92_vm13, %v83_v27 }
  0x4e   :  { %632 = vmatmul.msk.f32.gmra.mxu2 %vm92_vm13, %v279_v28  ;;  %652 = vmatmul.msk.f32.gmra.mxu3 %vm92_vm13, %v279_v28 }
  0x50   :  { %592 = vmatmul.msk.f32.gmra.mxu0 %vm92_vm13, %v84_v29 }
  0x52   :  { %612 = vmatmul.msk.f32.gmra.mxu1 %vm92_vm13, %v84_v29 }
  0x56   :  { %633 = vmatmul.msk.f32.gmra.mxu2 %vm92_vm13, %v280_v30  ;;  %653 = vmatmul.msk.f32.gmra.mxu3 %vm92_vm13, %v280_v30 }
  0x58   :  { %593 = vmatmul.msk.f32.gmra.mxu0 %vm92_vm13, %v85_v31 }
  0x5a   :  { %613 = vmatmul.msk.f32.gmra.mxu1 %vm92_vm13, %v85_v31 }
  0x5e   :  { %634 = vmatmul.msk.f32.gmra.mxu2 %vm92_vm13, %v281_v32  ;;  %654 = vmatmul.msk.f32.gmra.mxu3 %vm92_vm13, %v281_v32 }
  0x60   :  { %594 = vmatmul.msk.f32.gmra.mxu0 %vm92_vm13, %v86_v33 }
  0x62   :  { %614 = vmatmul.msk.f32.gmra.mxu1 %vm92_vm13, %v86_v33 }
  0x66   :  { %635 = vmatmul.msk.f32.gmra.mxu2 %vm92_vm13, %v282_v34  ;;  %655 = vmatmul.msk.f32.gmra.mxu3 %vm92_vm13, %v282_v34 }
  0x68   :  { %595 = vmatmul.msk.f32.gmra.mxu0 %vm92_vm13, %v87_v35 }
  0x6a   :  { %615 = vmatmul.msk.f32.gmra.mxu1 %vm92_vm13, %v87_v35 }
  0x6e   :  { %636 = vmatmul.msk.f32.gmra.mxu2 %vm92_vm13, %v283_v36  ;;  %656 = vmatmul.msk.f32.gmra.mxu3 %vm92_vm13, %v283_v36 }
  0x70   :  { %596 = vmatmul.msk.f32.gmra.mxu0 %vm92_vm13, %v88_v37 }
  0x72   :  { %616 = vmatmul.msk.f32.gmra.mxu1 %vm92_vm13, %v88_v37 }
  0x76   :  { %637 = vmatmul.msk.f32.gmra.mxu2 %vm92_vm13, %v284_v38  ;;  %657 = vmatmul.msk.f32.gmra.mxu3 %vm92_vm13, %v284_v38 }
  0x78   :  { %597 = vmatmul.msk.f32.gmra.mxu0 %vm92_vm13, %v89_v39 }
  0x7a   :  { %617 = vmatmul.msk.f32.gmra.mxu1 %vm92_vm13, %v89_v39 }
  0x7e   :  { %638 = vmatmul.msk.f32.gmra.mxu2 %vm92_vm13, %v285_v40  ;;  %658 = vmatmul.msk.f32.gmra.mxu3 %vm92_vm13, %v285_v40 }
  0x80   :  { %598 = vmatmul.msk.f32.gmra.mxu0 %vm92_vm13, %v90_v41 }
  0x82   :  { %618 = vmatmul.msk.f32.gmra.mxu1 %vm92_vm13, %v90_v41 }
  0x86   :  { %639 = vmatmul.msk.f32.gmra.mxu2 %vm92_vm13, %v286_v42  ;;  %659 = vmatmul.msk.f32.gmra.mxu3 %vm92_vm13, %v286_v42 }
  0x88   :  { %599 = vmatmul.msk.f32.gmra.mxu0 %vm92_vm13, %v91_v43 }
  0x8a   :  { %619 = vmatmul.msk.f32.gmra.mxu1 %vm92_vm13, %v91_v43 }
  0x8d   :  { %v158_v44 = vpop.f32.mrf.mxu0 }
  0x8f   :  { %v223_v45 = vpop.f32.mrf.mxu1 }
  0x91   :  { %v352_v46 = vpop.f32.mrf.mxu2  ;;  %v417_v47 = vpop.f32.mrf.mxu3 }
  0x92   :  { %v465_v48 = vmul.f32 %v352_v46, %v158_v44  ;;  %v466_v49 = vmul.f32 %v417_v47, %v223_v45 }
  0x95   :  { %v161_v50 = vpop.f32.mrf.mxu0 }
  0x97   :  { %v226_v51 = vpop.f32.mrf.mxu1 }
  0x99   :  { %v355_v52 = vpop.f32.mrf.mxu2  ;;  %v420_v53 = vpop.f32.mrf.mxu3 }
  0x9a   :  { %v467_v54 = vmul.f32 %v355_v52, %v161_v50  ;;  %v468_v55 = vmul.f32 %v420_v53, %v226_v51 }
  0x9c   :  { %v497_v56 = vadd.f32 %v467_v54, %v465_v48  ;;  %v518_v57 = vadd.f32 %v468_v55, %v466_v49 }
  0x9d   :  { %v164_v58 = vpop.f32.mrf.mxu0 }
  0x9f   :  { %v229_v59 = vpop.f32.mrf.mxu1 }
  0xa1   :  { %v358_v60 = vpop.f32.mrf.mxu2  ;;  %v423_v61 = vpop.f32.mrf.mxu3 }
  0xa2   :  { %v469_v62 = vmul.f32 %v358_v60, %v164_v58  ;;  %v470_v63 = vmul.f32 %v423_v61, %v229_v59 }
  0xa4   :  { %v498_v1 = vadd.f32 %v497_v56, %v469_v62  ;;  %v519_v2 = vadd.f32 %v518_v57, %v470_v63 }
  0xa5   :  { %v167_v3 = vpop.f32.mrf.mxu0 }
  0xa7   :  { %v232_v4 = vpop.f32.mrf.mxu1 }
  0xa9   :  { %v361_v5 = vpop.f32.mrf.mxu2  ;;  %v426_v6 = vpop.f32.mrf.mxu3 }
  0xaa   :  { %v471_v7 = vmul.f32 %v361_v5, %v167_v3  ;;  %v472_v8 = vmul.f32 %v426_v6, %v232_v4 }
  0xac   :  { %v499_v9 = vadd.f32 %v498_v1, %v471_v7  ;;  %v520_v10 = vadd.f32 %v519_v2, %v472_v8 }
  0xad   :  { %v170_v11 = vpop.f32.mrf.mxu0 }
  0xaf   :  { %v235_v12 = vpop.f32.mrf.mxu1 }
  0xb1   :  { %v364_v13 = vpop.f32.mrf.mxu2  ;;  %v429_v14 = vpop.f32.mrf.mxu3 }
  0xb2   :  { %v473_v15 = vmul.f32 %v364_v13, %v170_v11  ;;  %v474_v16 = vmul.f32 %v429_v14, %v235_v12 }
  0xb4   :  { %v500_v17 = vadd.f32 %v499_v9, %v473_v15  ;;  %v521_v18 = vadd.f32 %v520_v10, %v474_v16 }
  0xb5   :  { %v173_v19 = vpop.f32.mrf.mxu0 }
  0xb7   :  { %v238_v20 = vpop.f32.mrf.mxu1 }
  0xb9   :  { %v367_v21 = vpop.f32.mrf.mxu2  ;;  %v432_v22 = vpop.f32.mrf.mxu3 }
  0xba   :  { %v475_v51 = vmul.f32 %v367_v21, %v173_v19  ;;  %v476_v52 = vmul.f32 %v432_v22, %v238_v20 }
  0xbc   :  { %v501_v57 = vadd.f32 %v500_v17, %v475_v51  ;;  %v522_v58 = vadd.f32 %v521_v18, %v476_v52 }
  0xbd   :  { %v176_v23 = vpop.f32.mrf.mxu0 }
  0xbf   :  { %v241_v24 = vpop.f32.mrf.mxu1 }
  0xc1   :  { %v370_v25 = vpop.f32.mrf.mxu2  ;;  %v435_v26 = vpop.f32.mrf.mxu3 }
  0xc2   :  { %v477_v54 = vmul.f32 %v370_v25, %v176_v23  ;;  %v478_v55 = vmul.f32 %v435_v26, %v241_v24 }
  0xc4   :  { %v502_v63 = vadd.f32 %v501_v57, %v477_v54  ;;  %v523_v1 = vadd.f32 %v522_v58, %v478_v55 }
  0xc5   :  { %v179_v27 = vpop.f32.mrf.mxu0 }
  0xc7   :  { %v244_v28 = vpop.f32.mrf.mxu1 }
  0xc9   :  { %v373_v29 = vpop.f32.mrf.mxu2  ;;  %v438_v30 = vpop.f32.mrf.mxu3 }
  0xca   :  { %v479_v59 = vmul.f32 %v373_v29, %v179_v27  ;;  %v480_v60 = vmul.f32 %v438_v30, %v244_v28 }
  0xcc   :  { %v503_v4 = vadd.f32 %v502_v63, %v479_v59  ;;  %v524_v5 = vadd.f32 %v523_v1, %v480_v60 }
  0xcd   :  { %v182_v31 = vpop.f32.mrf.mxu0 }
  0xcf   :  { %v247_v32 = vpop.f32.mrf.mxu1 }
  0xd1   :  { %v376_v33 = vpop.f32.mrf.mxu2  ;;  %v441_v34 = vpop.f32.mrf.mxu3 }
  0xd2   :  { %v481_v2 = vmul.f32 %v376_v33, %v182_v31  ;;  %v482_v3 = vmul.f32 %v441_v34, %v247_v32 }
  0xd4   :  { %v504_v9 = vadd.f32 %v503_v4, %v481_v2  ;;  %v525_v10 = vadd.f32 %v524_v5, %v482_v3 }
  0xd5   :  { %v185_v35 = vpop.f32.mrf.mxu0 }
  0xd7   :  { %v250_v36 = vpop.f32.mrf.mxu1 }
  0xd9   :  { %v379_v37 = vpop.f32.mrf.mxu2  ;;  %v444_v38 = vpop.f32.mrf.mxu3 }
  0xda   :  { %v483_v6 = vmul.f32 %v379_v37, %v185_v35  ;;  %v484_v7 = vmul.f32 %v444_v38, %v250_v36 }
  0xdc   :  { %v505_v14 = vadd.f32 %v504_v9, %v483_v6  ;;  %v526_v15 = vadd.f32 %v525_v10, %v484_v7 }
  0xdd   :  { %v188_v39 = vpop.f32.mrf.mxu0 }
  0xdf   :  { %v253_v40 = vpop.f32.mrf.mxu1 }
  0xe1   :  { %v382_v41 = vpop.f32.mrf.mxu2  ;;  %v447_v42 = vpop.f32.mrf.mxu3 }
  0xe2   :  { %v485_v11 = vmul.f32 %v382_v41, %v188_v39  ;;  %v486_v12 = vmul.f32 %v447_v42, %v253_v40 }
  0xe4   :  { %v506_v20 = vadd.f32 %v505_v14, %v485_v11  ;;  %v527_v21 = vadd.f32 %v526_v15, %v486_v12 }
  0xe5   :  { %v191_v43 = vpop.f32.mrf.mxu0 }
  0xe7   :  { %v256_v44 = vpop.f32.mrf.mxu1 }
  0xe9   :  { %v385_v45 = vpop.f32.mrf.mxu2  ;;  %v450_v46 = vpop.f32.mrf.mxu3 }
  0xea   :  { %v487_v16 = vmul.f32 %v385_v45, %v191_v43  ;;  %v488_v17 = vmul.f32 %v450_v46, %v256_v44 }
  0xec   :  { %v507_v24 = vadd.f32 %v506_v20, %v487_v16  ;;  %v528_v25 = vadd.f32 %v527_v21, %v488_v17 }
  0xed   :  { %v194_v47 = vpop.f32.mrf.mxu0 }
  0xef   :  { %v259_v48 = vpop.f32.mrf.mxu1 }
  0xf1   :  { %v388_v49 = vpop.f32.mrf.mxu2  ;;  %v453_v50 = vpop.f32.mrf.mxu3 }
  0xf2   :  { %v489_v22 = vmul.f32 %v388_v49, %v194_v47  ;;  %v490_v23 = vmul.f32 %v453_v50, %v259_v48 }
  0xf4   :  { %v508_v28 = vadd.f32 %v507_v24, %v489_v22  ;;  %v529_v29 = vadd.f32 %v528_v25, %v490_v23 }
  0xf5   :  { %v197_v53 = vpop.f32.mrf.mxu0 }
  0xf7   :  { %v262_v56 = vpop.f32.mrf.mxu1 }
  0xf9   :  { %v391_v61 = vpop.f32.mrf.mxu2  ;;  %v456_v62 = vpop.f32.mrf.mxu3 }
  0xfa   :  { %v491_v26 = vmul.f32 %v391_v61, %v197_v53  ;;  %v492_v27 = vmul.f32 %v456_v62, %v262_v56 }
  0xfc   :  { %v509_v34 = vadd.f32 %v508_v28, %v491_v26  ;;  %v530_v35 = vadd.f32 %v529_v29, %v492_v27 }
  0xfd   :  { %v200_v8 = vpop.f32.mrf.mxu0 }
  0xff   :  { %v265_v13 = vpop.f32.mrf.mxu1 }
 0x101   :  { %v394_v18 = vpop.f32.mrf.mxu2  ;;  %v459_v19 = vpop.f32.mrf.mxu3 }
 0x102   :  { %v493_v30 = vmul.f32 %v394_v18, %v200_v8  ;;  %v494_v31 = vmul.f32 %v459_v19, %v265_v13 }
 0x104   :  { %v510_v38 = vadd.f32 %v509_v34, %v493_v30  ;;  %v531_v39 = vadd.f32 %v530_v35, %v494_v31 }
 0x105   :  { %v203_v32 = vpop.f32.mrf.mxu0 }
 0x107   :  { %v268_v33 = vpop.f32.mrf.mxu1 }
 0x109   :  { %v397_v36 = vpop.f32.mrf.mxu2  ;;  %v462_v37 = vpop.f32.mrf.mxu3 }
 0x10a   :  { %v495_v40 = vmul.f32 %v397_v36, %v203_v32  ;;  %v496_v41 = vmul.f32 %v462_v37, %v268_v33 }
 0x10c   :  { %v511_v42 = vadd.f32 %v510_v38, %v495_v40  ;;  %v532_v43 = vadd.f32 %v531_v39, %v496_v41 }
 0x10e   :  { %v512_v44 = vrot.slane %v511_v42, 4  ;;  %v533_v45 = vrot.slane %v532_v43, 4 }
 0x110   :  { %v513_v46 = vadd.f32 %v512_v44, %v511_v42  ;;  %v534_v47 = vadd.f32 %v533_v45, %v532_v43 }
 0x112   :  { %v514_v48 = vrot.slane %v513_v46, 2  ;;  %v535_v49 = vrot.slane %v534_v47, 2 }
 0x114   :  { %v515_v50 = vadd.f32 %v514_v48, %v513_v46  ;;  %v536_v51 = vadd.f32 %v535_v49, %v534_v47 }
 0x116   :  { %v516_v52 = vrot.slane %v515_v50, 1  ;;  %v537_v53 = vrot.slane %v536_v51, 1 }
 0x118   :  { %v517_v54 = vadd.f32 %v516_v52, %v515_v50  ;;  %v538_v55 = vadd.f32 %v537_v53, %v536_v51 }
 0x11a   :  { %v539_v56 = vsub.f32 0.0, %v517_v54  ;;  %v540_v57 = vsub.f32 0.0, %v538_v55 }
 0x11c   :  { %v541_v58 = vmul.f32 1.442695, %v539_v56  ;;  %v543_v59 = vmul.f32 1.442695, %v540_v57 }
 0x11e   :  { %661 = vpow2.f32 %v541_v58 }
 0x11f   :  { %663 = vpow2.f32 %v543_v59 }
 0x124   :  { %v662_v60 = vpop.eup %661 }
 0x125   :  { %v664_v61 = vpop.eup %663  ;;  %v545_v62 = vadd.f32 1.0, %v662_v60 }
 0x126   :  { %v546_v63 = vadd.f32 1.0, %v664_v61 }
 0x128   :  { %665 = vrcp.f32 %v546_v63 }
 0x129   :  { %667 = vrcp.f32 %v545_v62 }
 0x12e   :  { %v666_v1 = vpop.eup %665 }
 0x12f   :  { %v551_v2 = vrot.slane %v666_v1, 7  ;;  %v668_v3 = vpop.eup %667 }
 0x131   :  { %v553_v4 = vsel %vm552_vm1, %v668_v3, %v551_v2 }
 0x132   :  { %559 = vst.msk [vmem:[%s870_s4] sm:$0x3] %vm557_vm2, %v553_v4 }

</bundles_post_ra>
